<compile_context>
chip_gen: v5e
topology: v5e:2x2
jax: 0.10.0
libtpu: 0.0.40
codegen_flags: <defaults>
</compile_context>

<pallas_src>
import functools

import jax
import jax.numpy as jnp
import numpy as np
from jax.experimental import pallas as pl
from jax.experimental.pallas import tpu as pltpu


# --------------------------------------------------------------------------
# Fused Q/K/V projection: grid (row-tile, head), head-major bf16 outputs.
# --------------------------------------------------------------------------
def _qkv_kernel(x_ref, wq_ref, wk_ref, wv_ref, bq_ref, bk_ref, bv_ref,
                q_ref, k_ref, v_ref, *, scale):
    x = x_ref[...]                                            # (tm, d_model) bf16
    q = jnp.dot(x, wq_ref[0], preferred_element_type=jnp.float32) + bq_ref[0]
    q_ref[0] = (q * scale).astype(q_ref.dtype)                # scale folded into Q
    k = jnp.dot(x, wk_ref[0], preferred_element_type=jnp.float32) + bk_ref[0]
    k_ref[0] = k.astype(k_ref.dtype)
    v = jnp.dot(x, wv_ref[0], preferred_element_type=jnp.float32) + bv_ref[0]
    v_ref[0] = v.astype(v_ref.dtype)


def _qkv_projection(x, wq, wk, wv, bq, bk, bv, *, scale, tm):
    """x: (M, d_model) bf16; wq/wk/wv: (H, d_model, d); bq/bk/bv: (H, 1, d) f32.

    Returns q, k, v as (H, M, d) bf16 (head-major: no XLA transposes needed)."""
    M, d_model = x.shape
    H, _, d_k = wq.shape
    d_v = wv.shape[-1]
    assert M % tm == 0
    out_shapes = (jax.ShapeDtypeStruct((H, M, d_k), jnp.bfloat16),
                  jax.ShapeDtypeStruct((H, M, d_k), jnp.bfloat16),
                  jax.ShapeDtypeStruct((H, M, d_v), jnp.bfloat16))
    return pl.pallas_call(
        functools.partial(_qkv_kernel, scale=scale),
        out_shape=out_shapes,
        grid_spec=pltpu.PrefetchScalarGridSpec(
            num_scalar_prefetch=0,
            grid=(M // tm, H),
            in_specs=[
                pl.BlockSpec((tm, d_model), lambda i, h: (i, 0)),     # x: fetched once per i
                pl.BlockSpec((1, d_model, d_k), lambda i, h: (h, 0, 0)),
                pl.BlockSpec((1, d_model, d_k), lambda i, h: (h, 0, 0)),
                pl.BlockSpec((1, d_model, d_v), lambda i, h: (h, 0, 0)),
                pl.BlockSpec((1, 1, d_k), lambda i, h: (h, 0, 0)),
                pl.BlockSpec((1, 1, d_k), lambda i, h: (h, 0, 0)),
                pl.BlockSpec((1, 1, d_v), lambda i, h: (h, 0, 0)),
            ],
            out_specs=[
                pl.BlockSpec((1, tm, d_k), lambda i, h: (h, i, 0)),
                pl.BlockSpec((1, tm, d_k), lambda i, h: (h, i, 0)),
                pl.BlockSpec((1, tm, d_v), lambda i, h: (h, i, 0)),
            ]),
        compiler_params=pltpu.CompilerParams(
            dimension_semantics=("parallel", "arbitrary")),
    )(x, wq, wk, wv, bq, bk, bv)


# --------------------------------------------------------------------------
# Output projection: plain tiled (x @ W + b), weights resident in VMEM.
# --------------------------------------------------------------------------
def _linear_kernel(x_ref, w_ref, b_ref, o_ref):
    x = x_ref[...].astype(jnp.bfloat16)
    acc = jnp.dot(x, w_ref[...], preferred_element_type=jnp.float32)
    o_ref[...] = (acc + b_ref[...].astype(jnp.float32)).astype(o_ref.dtype)


def _linear(x, w, b, *, out_dtype=jnp.float32, tm=128):
    M, K = x.shape
    K2, Nout = w.shape
    assert K == K2 and M % tm == 0
    return pl.pallas_call(
        _linear_kernel,
        out_shape=jax.ShapeDtypeStruct((M, Nout), out_dtype),
        grid_spec=pltpu.PrefetchScalarGridSpec(
            num_scalar_prefetch=0,
            grid=(M // tm,),
            in_specs=[
                pl.BlockSpec((tm, K), lambda i: (i, 0)),
                pl.BlockSpec((K, Nout), lambda i: (0, 0)),
                pl.BlockSpec((1, Nout), lambda i: (0, 0)),
            ],
            out_specs=pl.BlockSpec((tm, Nout), lambda i: (i, 0)),
        ),
        compiler_params=pltpu.CompilerParams(dimension_semantics=("parallel",)),
    )(x, w, b)


# --------------------------------------------------------------------------
# Flash-style attention kernel with relative-position key/value terms.
# --------------------------------------------------------------------------
def _attn_kernel(q_ref, k_ref, v_ref, kb_ref, ev_ref, *rest, has_mask):
    if has_mask:
        mask_ref = rest[0]
        o_ref, m_scr, l_scr, acc_scr = rest[1:]
    else:
        mask_ref = None
        o_ref, m_scr, l_scr, acc_scr = rest

    H, t, _ = q_ref.shape
    W = ev_ref.shape[2]
    ki = pl.program_id(2)

    @pl.when(ki == 0)
    def _init():
        m_scr[...] = jnp.full_like(m_scr, -1e30)
        l_scr[...] = jnp.zeros_like(l_scr)
        acc_scr[...] = jnp.zeros_like(acc_scr)

    # Hoisted per-row shift masks of the skew network (shared by all heads).
    row = jax.lax.broadcasted_iota(jnp.int32, (t, 1), 0)
    amt = (t - 1) - row                                      # per-row right-shift amount
    shift_masks = []
    sh = 1
    while sh < t:
        shift_masks.append((((amt & sh) != 0), sh))
        sh *= 2

    def skew(p):
        """(t, t) -> (t, W): out[ii, t-1+jj-ii] = p[ii, jj], zeros elsewhere."""
        # TODO(synk): single strided pltpu.roll would do this in one XLU op.
        y = jnp.concatenate([p, jnp.zeros((t, W - t), p.dtype)], axis=-1)
        for msk, s_ in shift_masks:
            rolled = jnp.concatenate([y[..., -s_:], y[..., :-s_]], axis=-1)
            y = jnp.where(msk, rolled, y)
        return y

    # H is small (<= ~8); fully unrolled.  TODO(synk): lax.fori_loop for large H.
    for h in range(H):
        q = q_ref[h]                                          # (t, d_k) bf16 (pre-scaled)
        k = k_ref[h]                                          # (t, d_k) bf16
        v = v_ref[h]                                          # (t, d_v) bf16

        s = jax.lax.dot_general(q, k, (((1,), (1,)), ((), ())),
                                preferred_element_type=jnp.float32)       # (t, t)
        # relative-key bias (precomputed host-side, scale folded in)
        s = s + kb_ref[0, h].astype(jnp.float32)
        if mask_ref is not None:
            # additive mask bias (0 / -1e10), replaces compare+select
            s = s + mask_ref[0, h].astype(jnp.float32)

        # online softmax
        m_prev = m_scr[h]                                                  # (t, 1)
        m_new = jnp.maximum(m_prev, jnp.max(s, axis=-1, keepdims=True))
        alpha = jnp.exp(m_prev - m_new)
        p = jnp.exp(s - m_new)                                             # (t, t)
        l_scr[h] = alpha * l_scr[h] + jnp.sum(p, axis=-1, keepdims=True)
        m_scr[h] = m_new

        p_bf = p.astype(jnp.bfloat16)
        pv = jnp.dot(p_bf, v, preferred_element_type=jnp.float32)          # (t, d_v)
        # relative-value term: skew(P) @ E_v window (single MXU matmul)
        rel = jnp.dot(skew(p_bf), ev_ref[0, h],
                      preferred_element_type=jnp.float32)                  # (t, d_v)
        acc_scr[h] = alpha * acc_scr[h] + pv + rel

    @pl.when(ki == pl.num_programs(2) - 1)
    def _finalize():
        cols = []
        for h in range(H):
            inv_l = pl.reciprocal(l_scr[h], approx=True)                   # (t, 1)
            cols.append(acc_scr[h] * inv_l)
        # lane-dense (t, H*d_v) bf16 store
        o_ref[0] = jnp.concatenate(cols, axis=-1).astype(o_ref.dtype)


def _rel_flash_attention(q, k, v, kbias, ev_win, maskb, *, batch, t):
    """q/k/v: (H, B*N, d) bf16 head-major.  Returns (B, N, H*d_v) bf16."""
    H, M, d_k = q.shape
    d_v = v.shape[-1]
    B = batch
    N = M // B
    nblk = N // t
    W = 2 * t
    ndiag = 2 * nblk - 1
    assert kbias.shape == (ndiag, H, t, t)
    assert ev_win.shape == (ndiag, H, W, d_v)

    in_specs = [
        pl.BlockSpec((H, t, d_k), lambda b, qi, ki: (0, b * nblk + qi, 0)),
        pl.BlockSpec((H, t, d_k), lambda b, qi, ki: (0, b * nblk + ki, 0)),
        pl.BlockSpec((H, t, d_v), lambda b, qi, ki: (0, b * nblk + ki, 0)),
        pl.BlockSpec((1, H, t, t), lambda b, qi, ki: (ki - qi + nblk - 1, 0, 0, 0)),
        pl.BlockSpec((1, H, W, d_v), lambda b, qi, ki: (ki - qi + nblk - 1, 0, 0, 0)),
    ]
    args = [q, k, v, kbias, ev_win]
    if maskb is not None:
        in_specs.append(pl.BlockSpec((1, H, t, t), lambda b, qi, ki: (b, 0, qi, ki)))
        args.append(maskb)

    return pl.pallas_call(
        functools.partial(_attn_kernel, has_mask=maskb is not None),
        out_shape=jax.ShapeDtypeStruct((B, N, H * d_v), jnp.bfloat16),
        grid_spec=pltpu.PrefetchScalarGridSpec(
            num_scalar_prefetch=0,
            grid=(B, nblk, nblk),
            in_specs=in_specs,
            out_specs=pl.BlockSpec((1, t, H * d_v), lambda b, qi, ki: (b, qi, 0)),
            scratch_shapes=[
                pltpu.VMEM((H, t, 1), jnp.float32),      # running max m
                pltpu.VMEM((H, t, 1), jnp.float32),      # running denom l
                pltpu.VMEM((H, t, d_v), jnp.float32),    # running numerator
            ],
        ),
        compiler_params=pltpu.CompilerParams(
            dimension_semantics=("parallel", "parallel", "arbitrary"),
            vmem_limit_bytes=32 * 1024 * 1024,
        ),
    )(*args)


# --------------------------------------------------------------------------
# Host-side precompute of the relative-position tables used by the kernel.
# --------------------------------------------------------------------------
def _build_rel_tables(P_k, P_v, *, seq_len, tile, max_distance, scale):
    t = tile
    W = 2 * t
    nblk = seq_len // t
    ndiag = 2 * nblk - 1
    Z = max_distance - 1
    d = jnp.arange(ndiag) - (nblk - 1)                               # block-diag offsets

    # relative-key bias tiles: kb[d, h, ii, jj] = P_k[Z + d*t + jj - ii, h] * scale
    rel = (Z + d[:, None, None] * t
           + jnp.arange(t)[None, None, :] - jnp.arange(t)[None, :, None])   # (ndiag,t,t)
    pk = jnp.asarray(P_k, jnp.float32)                               # (num_rel, H)
    kbias = (jnp.transpose(pk[rel], (0, 3, 1, 2)) * scale).astype(jnp.bfloat16)

    # relative-value windows: ev[d, h, w, :] = P_v[Z - (t-1) + d*t + w, h, :]
    starts = Z - (t - 1) + d * t
    widx = starts[:, None] + jnp.arange(W)[None, :]                  # (ndiag, W), >= 0
    pv_pad = jnp.pad(jnp.asarray(P_v, jnp.float32), ((0, W), (0, 0), (0, 0)))
    ev = jnp.transpose(pv_pad[widx], (0, 2, 1, 3)).astype(jnp.bfloat16)     # (ndiag,H,W,d_v)
    return kbias, ev


# --------------------------------------------------------------------------
# Full forward pass (equivalent to the PyTorch module with mode="both").
# --------------------------------------------------------------------------
def mha_relpos_forward(X, params, mask=None, *, n_heads, d_k=None, d_v=None,
                       max_distance=512, tile=128):
    B, N, d_model = X.shape
    H = n_heads
    d_k = d_k or d_model // H
    d_v = d_v or d_model // H
    if N > max_distance:
        raise ValueError(f"sequence length {N} > max_distance {max_distance}")
    assert N % tile == 0 and (B * N) % tile == 0
    M = B * N
    scale = float(1.0 / np.sqrt(d_k))
    bf16 = jnp.bfloat16

    x2 = X.reshape(M, d_model).astype(bf16)                   # activation read once, bf16
    wq3 = jnp.asarray(params["W_q"]).reshape(H, d_k, d_model).transpose(0, 2, 1).astype(bf16)
    wk3 = jnp.asarray(params["W_k"]).reshape(H, d_k, d_model).transpose(0, 2, 1).astype(bf16)
    wv3 = jnp.asarray(params["W_v"]).reshape(H, d_v, d_model).transpose(0, 2, 1).astype(bf16)
    bq3 = jnp.asarray(params["b_q"], jnp.float32).reshape(H, 1, d_k)
    bk3 = jnp.asarray(params["b_k"], jnp.float32).reshape(H, 1, d_k)
    bv3 = jnp.asarray(params["b_v"], jnp.float32).reshape(H, 1, d_v)
    wo = jnp.asarray(params["W_o"]).T.astype(bf16)            # (H*d_v, d_model)
    bo = jnp.asarray(params["b_o"], jnp.float32)[None, :]

    # Fused QKV projection, head-major (H, M, d) bf16 outputs, scale folded into Q.
    q, k, v = _qkv_projection(x2, wq3, wk3, wv3, bq3, bk3, bv3, scale=scale, tm=tile)

    kbias, ev_win = _build_rel_tables(params["P_k"], params["P_v"],
                                      seq_len=N, tile=tile,
                                      max_distance=max_distance, scale=scale)

    maskb = None
    if mask is not None:
        # additive mask bias: 0 where attended, -1e10 (PyTorch -INF convention) where masked
        maskb = jnp.where(jnp.asarray(mask) != 0, 0.0, -1e10).astype(bf16)

    ctx = _rel_flash_attention(q, k, v, kbias, ev_win, maskb, batch=B, t=tile)  # (B,N,H*d_v) bf16

    out = _linear(ctx.reshape(M, H * d_v), wo, bo, out_dtype=jnp.float32, tm=tile)
    return out.reshape(B, N, d_model)


# --------------------------------------------------------------------------
# Pure-JAX reference (mirrors the PyTorch module math; same bf16 cast points
# as the kernel so the comparison tolerance can be tight).
# --------------------------------------------------------------------------
def reference_forward(X, p, mask, *, n_heads, d_k, d_v, max_distance):
    bf16, f32 = jnp.bfloat16, jnp.float32

    def mm(a, b):
        return jnp.dot(a.astype(bf16), b.astype(bf16), preferred_element_type=f32)

    B, N, d_model = X.shape
    H = n_heads
    scale = 1.0 / np.sqrt(d_k)
    x2 = X.reshape(B * N, d_model)
    Q = (mm(x2, p["W_q"].T) + p["b_q"]) * scale
    K = mm(x2, p["W_k"].T) + p["b_k"]
    V = mm(x2, p["W_v"].T) + p["b_v"]
    Q = Q.reshape(B, N, H, d_k).transpose(0, 2, 1, 3).astype(bf16)
    K = K.reshape(B, N, H, d_k).transpose(0, 2, 1, 3).astype(bf16)
    V = V.reshape(B, N, H, d_v).transpose(0, 2, 1, 3).astype(bf16)

    Z = max_distance - 1
    rel = Z + jnp.arange(N)[None, :] - jnp.arange(N)[:, None]   # (N, N)
    A_k = p["P_k"][rel]                                         # (N, N, H)
    A_v = p["P_v"][rel]                                         # (N, N, H, d_v)

    scores = jnp.einsum("bhid,bhjd->bhij", Q, K, preferred_element_type=f32)
    scores = scores + jnp.transpose(A_k, (2, 0, 1))[None] * scale
    if mask is not None:
        scores = jnp.where(mask != 0, scores, -1e10)
    attn = jax.nn.softmax(scores, axis=-1)
    attn_bf = attn.astype(bf16)
    ctx = jnp.einsum("bhij,bhjd->bhid", attn_bf, V, preferred_element_type=f32)
    ctx = ctx + jnp.einsum("bhij,ijhd->bhid", attn_bf, A_v.astype(bf16),
                           preferred_element_type=f32)
    ctx = ctx.transpose(0, 2, 1, 3).reshape(B * N, H * d_v)
    out = mm(ctx, p["W_o"].T) + p["b_o"]
    return out.reshape(B, N, d_model)


# --------------------------------------------------------------------------
if __name__ == "__main__":
    B, N, d_model, H = 2, 256, 256, 4
    max_distance = 256
    d_k = d_v = d_model // H                      # 64
    num_rel = 2 * max_distance - 1

    key = jax.random.PRNGKey(0)
    ks = jax.random.split(key, 12)

    def uniform(k, shape, bound):
        return jax.random.uniform(k, shape, jnp.float32, -bound, bound)

    b_in = 1.0 / np.sqrt(d_model)
    b_o = 1.0 / np.sqrt(H * d_v)
    params = {
        "W_q": uniform(ks[0], (H * d_k, d_model), b_in),
        "b_q": uniform(ks[1], (H * d_k,), b_in),
        "W_k": uniform(ks[2], (H * d_k, d_model), b_in),
        "b_k": uniform(ks[3], (H * d_k,), b_in),
        "W_v": uniform(ks[4], (H * d_v, d_model), b_in),
        "b_v": uniform(ks[5], (H * d_v,), b_in),
        "W_o": uniform(ks[6], (d_model, H * d_v), b_o),
        "b_o": uniform(ks[7], (d_model,), b_o),
        "P_k": jax.random.normal(ks[8], (num_rel, H), jnp.float32),
        "P_v": jax.random.normal(ks[9], (num_rel, H, d_v), jnp.float32),
    }
    X = jax.random.normal(ks[10], (B, N, d_model), jnp.float32)
    causal = (jnp.arange(N)[None, :] <= jnp.arange(N)[:, None]).astype(jnp.float32)
    mask = jnp.broadcast_to(causal, (B, H, N, N))

    def check(out, ref, name):
        a = np.asarray(out, dtype=np.float32)
        b = np.asarray(ref, dtype=np.float32)
        assert np.all(np.isfinite(a)), f"{name}: non-finite output"
        err = float(np.max(np.abs(a - b)))
        assert err < 5e-2, f"{name}: max abs error {err}"

    # mask=None path
    out0 = mha_relpos_forward(X, params, mask=None, n_heads=H, d_k=d_k, d_v=d_v,
                              max_distance=max_distance, tile=128)
    out0 = jax.block_until_ready(out0)
    ref0 = reference_forward(X, params, None, n_heads=H, d_k=d_k, d_v=d_v,
                             max_distance=max_distance)
    check(out0, ref0, "no-mask")

    # masked path (causal mask, streamed as additive bf16 bias tiles)
    out1 = mha_relpos_forward(X, params, mask=mask, n_heads=H, d_k=d_k, d_v=d_v,
                              max_distance=max_distance, tile=128)
    out1 = jax.block_until_ready(out1)
    ref1 = reference_forward(X, params, mask, n_heads=H, d_k=d_k, d_v=d_v,
                             max_distance=max_distance)
    check(out1, ref1, "causal-mask")

    print("KERNEL_OK")
</pallas_src>

<mosaic_0001>
module attributes {stable_mosaic.version = 11 : i64} {
  func.func @_qkv_kernel(%arg0: i32, %arg1: i32, %arg2: memref<128x256xbf16, #tpu.memory_space<vmem>>, %arg3: memref<1x256x64xbf16, #tpu.memory_space<vmem>>, %arg4: memref<1x256x64xbf16, #tpu.memory_space<vmem>>, %arg5: memref<1x256x64xbf16, #tpu.memory_space<vmem>>, %arg6: memref<1x1x64xf32, #tpu.memory_space<vmem>>, %arg7: memref<1x1x64xf32, #tpu.memory_space<vmem>>, %arg8: memref<1x1x64xf32, #tpu.memory_space<vmem>>, %arg9: memref<1x128x64xbf16, #tpu.memory_space<vmem>>, %arg10: memref<1x128x64xbf16, #tpu.memory_space<vmem>>, %arg11: memref<1x128x64xbf16, #tpu.memory_space<vmem>>) attributes {dimension_semantics = [#tpu.dimension_semantics<parallel>, #tpu.dimension_semantics<arbitrary>], iteration_bounds = array<i64: 4, 4>, scalar_prefetch = 0 : i64, scratch_operands = 0 : i64, tpu.core_type = #tpu.core_type<tc>, window_params = [{transform_indices = @transform_0, window_bounds = array<i64: 128, 256>}, {transform_indices = @transform_1, window_bounds = array<i64: 1, 256, 64>}, {transform_indices = @transform_2, window_bounds = array<i64: 1, 256, 64>}, {transform_indices = @transform_3, window_bounds = array<i64: 1, 256, 64>}, {transform_indices = @transform_4, window_bounds = array<i64: 1, 1, 64>}, {transform_indices = @transform_5, window_bounds = array<i64: 1, 1, 64>}, {transform_indices = @transform_6, window_bounds = array<i64: 1, 1, 64>}, {transform_indices = @transform_7, window_bounds = array<i64: 1, 128, 64>}, {transform_indices = @transform_8, window_bounds = array<i64: 1, 128, 64>}, {transform_indices = @transform_9, window_bounds = array<i64: 1, 128, 64>}]} {
    %c0 = arith.constant 0 : index
    %c0_0 = arith.constant 0 : index
    %0 = vector.load %arg2[%c0, %c0_0] : memref<128x256xbf16, #tpu.memory_space<vmem>>, vector<128x256xbf16>
    %c0_1 = arith.constant 0 : index
    %c0_2 = arith.constant 0 : index
    %c0_3 = arith.constant 0 : index
    %1 = vector.load %arg3[%c0_1, %c0_2, %c0_3] : memref<1x256x64xbf16, #tpu.memory_space<vmem>>, vector<1x256x64xbf16>
    %2 = vector.shape_cast %1 : vector<1x256x64xbf16> to vector<256x64xbf16>
    %cst = arith.constant dense<0.000000e+00> : vector<128x64xf32>
    %3 = tpu.matmul %0, %2, %cst {dimension_numbers = #tpu.dot_dimension_numbers<[1], [0], [0], [1], [0, 0, 1, 1], [], []>} : vector<128x256xbf16>, vector<256x64xbf16>, vector<128x64xf32> -> vector<128x64xf32>
    %c0_4 = arith.constant 0 : index
    %c0_5 = arith.constant 0 : index
    %c0_6 = arith.constant 0 : index
    %4 = vector.load %arg6[%c0_4, %c0_5, %c0_6] : memref<1x1x64xf32, #tpu.memory_space<vmem>>, vector<1x1x64xf32>
    %5 = vector.shape_cast %4 : vector<1x1x64xf32> to vector<1x64xf32>
    %6 = vector.broadcast %5 : vector<1x64xf32> to vector<128x64xf32>
    %7 = arith.addf %3, %6 : vector<128x64xf32>
    %cst_7 = arith.constant 1.250000e-01 : f32
    %8 = vector.broadcast %cst_7 : f32 to vector<128x64xf32>
    %9 = arith.mulf %7, %8 : vector<128x64xf32>
    %10 = arith.truncf %9 : vector<128x64xf32> to vector<128x64xbf16>
    %c0_8 = arith.constant 0 : index
    %c0_9 = arith.constant 0 : index
    %c0_10 = arith.constant 0 : index
    %11 = vector.load %arg9[%c0_8, %c0_9, %c0_10] : memref<1x128x64xbf16, #tpu.memory_space<vmem>>, vector<1x128x64xbf16>
    %12 = vector.shape_cast %11 : vector<1x128x64xbf16> to vector<128x64xbf16>
    %13 = vector.shape_cast %10 : vector<128x64xbf16> to vector<1x128x64xbf16>
    tpu.vector_store %arg9[%c0_8, %c0_9, %c0_10], %13 {strides = array<i32>} : memref<1x128x64xbf16, #tpu.memory_space<vmem>>, vector<1x128x64xbf16>,
    %c0_11 = arith.constant 0 : index
    %c0_12 = arith.constant 0 : index
    %c0_13 = arith.constant 0 : index
    %14 = vector.load %arg4[%c0_11, %c0_12, %c0_13] : memref<1x256x64xbf16, #tpu.memory_space<vmem>>, vector<1x256x64xbf16>
    %15 = vector.shape_cast %14 : vector<1x256x64xbf16> to vector<256x64xbf16>
    %cst_14 = arith.constant dense<0.000000e+00> : vector<128x64xf32>
    %16 = tpu.matmul %0, %15, %cst_14 {dimension_numbers = #tpu.dot_dimension_numbers<[1], [0], [0], [1], [0, 0, 1, 1], [], []>} : vector<128x256xbf16>, vector<256x64xbf16>, vector<128x64xf32> -> vector<128x64xf32>
    %c0_15 = arith.constant 0 : index
    %c0_16 = arith.constant 0 : index
    %c0_17 = arith.constant 0 : index
    %17 = vector.load %arg7[%c0_15, %c0_16, %c0_17] : memref<1x1x64xf32, #tpu.memory_space<vmem>>, vector<1x1x64xf32>
    %18 = vector.shape_cast %17 : vector<1x1x64xf32> to vector<1x64xf32>
    %19 = vector.broadcast %18 : vector<1x64xf32> to vector<128x64xf32>
    %20 = arith.addf %16, %19 : vector<128x64xf32>
    %21 = arith.truncf %20 : vector<128x64xf32> to vector<128x64xbf16>
    %c0_18 = arith.constant 0 : index
    %c0_19 = arith.constant 0 : index
    %c0_20 = arith.constant 0 : index
    %22 = vector.load %arg10[%c0_18, %c0_19, %c0_20] : memref<1x128x64xbf16, #tpu.memory_space<vmem>>, vector<1x128x64xbf16>
    %23 = vector.shape_cast %22 : vector<1x128x64xbf16> to vector<128x64xbf16>
    %24 = vector.shape_cast %21 : vector<128x64xbf16> to vector<1x128x64xbf16>
    tpu.vector_store %arg10[%c0_18, %c0_19, %c0_20], %24 {strides = array<i32>} : memref<1x128x64xbf16, #tpu.memory_space<vmem>>, vector<1x128x64xbf16>,
    %c0_21 = arith.constant 0 : index
    %c0_22 = arith.constant 0 : index
    %c0_23 = arith.constant 0 : index
    %25 = vector.load %arg5[%c0_21, %c0_22, %c0_23] : memref<1x256x64xbf16, #tpu.memory_space<vmem>>, vector<1x256x64xbf16>
    %26 = vector.shape_cast %25 : vector<1x256x64xbf16> to vector<256x64xbf16>
    %cst_24 = arith.constant dense<0.000000e+00> : vector<128x64xf32>
    %27 = tpu.matmul %0, %26, %cst_24 {dimension_numbers = #tpu.dot_dimension_numbers<[1], [0], [0], [1], [0, 0, 1, 1], [], []>} : vector<128x256xbf16>, vector<256x64xbf16>, vector<128x64xf32> -> vector<128x64xf32>
    %c0_25 = arith.constant 0 : index
    %c0_26 = arith.constant 0 : index
    %c0_27 = arith.constant 0 : index
    %28 = vector.load %arg8[%c0_25, %c0_26, %c0_27] : memref<1x1x64xf32, #tpu.memory_space<vmem>>, vector<1x1x64xf32>
    %29 = vector.shape_cast %28 : vector<1x1x64xf32> to vector<1x64xf32>
    %30 = vector.broadcast %29 : vector<1x64xf32> to vector<128x64xf32>
    %31 = arith.addf %27, %30 : vector<128x64xf32>
    %32 = arith.truncf %31 : vector<128x64xf32> to vector<128x64xbf16>
    %c0_28 = arith.constant 0 : index
    %c0_29 = arith.constant 0 : index
    %c0_30 = arith.constant 0 : index
    %33 = vector.load %arg11[%c0_28, %c0_29, %c0_30] : memref<1x128x64xbf16, #tpu.memory_space<vmem>>, vector<1x128x64xbf16>
    %34 = vector.shape_cast %33 : vector<1x128x64xbf16> to vector<128x64xbf16>
    %35 = vector.shape_cast %32 : vector<128x64xbf16> to vector<1x128x64xbf16>
    tpu.vector_store %arg11[%c0_28, %c0_29, %c0_30], %35 {strides = array<i32>} : memref<1x128x64xbf16, #tpu.memory_space<vmem>>, vector<1x128x64xbf16>,
    return
  }
  func.func @transform_0(%arg0: i32, %arg1: i32) -> (i32, i32) {
    %c0_i32 = arith.constant 0 : i32
    %c0_i32_0 = arith.constant 0 : i32
    return %arg0, %c0_i32 : i32, i32
  }
  func.func @transform_1(%arg0: i32, %arg1: i32) -> (i32, i32, i32) {
    %c0_i32 = arith.constant 0 : i32
    %c0_i32_0 = arith.constant 0 : i32
    %c0_i32_1 = arith.constant 0 : i32
    return %arg1, %c0_i32, %c0_i32_0 : i32, i32, i32
  }
  func.func @transform_2(%arg0: i32, %arg1: i32) -> (i32, i32, i32) {
    %c0_i32 = arith.constant 0 : i32
    %c0_i32_0 = arith.constant 0 : i32
    %c0_i32_1 = arith.constant 0 : i32
    return %arg1, %c0_i32, %c0_i32_0 : i32, i32, i32
  }
  func.func @transform_3(%arg0: i32, %arg1: i32) -> (i32, i32, i32) {
    %c0_i32 = arith.constant 0 : i32
    %c0_i32_0 = arith.constant 0 : i32
    %c0_i32_1 = arith.constant 0 : i32
    return %arg1, %c0_i32, %c0_i32_0 : i32, i32, i32
  }
  func.func @transform_4(%arg0: i32, %arg1: i32) -> (i32, i32, i32) {
    %c0_i32 = arith.constant 0 : i32
    %c0_i32_0 = arith.constant 0 : i32
    %c0_i32_1 = arith.constant 0 : i32
    return %arg1, %c0_i32, %c0_i32_0 : i32, i32, i32
  }
  func.func @transform_5(%arg0: i32, %arg1: i32) -> (i32, i32, i32) {
    %c0_i32 = arith.constant 0 : i32
    %c0_i32_0 = arith.constant 0 : i32
    %c0_i32_1 = arith.constant 0 : i32
    return %arg1, %c0_i32, %c0_i32_0 : i32, i32, i32
  }
  func.func @transform_6(%arg0: i32, %arg1: i32) -> (i32, i32, i32) {
    %c0_i32 = arith.constant 0 : i32
    %c0_i32_0 = arith.constant 0 : i32
    %c0_i32_1 = arith.constant 0 : i32
    return %arg1, %c0_i32, %c0_i32_0 : i32, i32, i32
  }
  func.func @transform_7(%arg0: i32, %arg1: i32) -> (i32, i32, i32) {
    %c0_i32 = arith.constant 0 : i32
    %c0_i32_0 = arith.constant 0 : i32
    return %arg1, %arg0, %c0_i32 : i32, i32, i32
  }
  func.func @transform_8(%arg0: i32, %arg1: i32) -> (i32, i32, i32) {
    %c0_i32 = arith.constant 0 : i32
    %c0_i32_0 = arith.constant 0 : i32
    return %arg1, %arg0, %c0_i32 : i32, i32, i32
  }
  func.func @transform_9(%arg0: i32, %arg1: i32) -> (i32, i32, i32) {
    %c0_i32 = arith.constant 0 : i32
    %c0_i32_0 = arith.constant 0 : i32
    return %arg1, %arg0, %c0_i32 : i32, i32, i32
  }
}

</mosaic_0001>

<bundles_post_ra>
// kernel: tpu_custom_call.1
= control target key start
LH: loop header
LB: loop body
LE: loop exit
PB: predicated region body
PF: predicated region fallthrough
CT: control target
= control target key end

     0   :  { %s2154_s30 = smov 0   ;;  %s2156_s10 = smov 0   ;;  %s2572_s0 = inlined_call_operand.vmem [shape: bf16[512,256], index: 0, kind: input, shape index: {}]   ;;  %s2573_s1 = inlined_call_operand.vmem [shape: bf16[4,256,64], index: 1, kind: input, shape index: {}]   ;;  %s2574_s2 = inlined_call_operand.vmem [shape: bf16[4,256,64], index: 2, kind: input, shape index: {}]   ;;  %s2575_s3 = inlined_call_operand.vmem [shape: bf16[4,256,64], index: 3, kind: input, shape index: {}]   ;;  %s2576_s4 = inlined_call_operand.vmem [shape: f32[4,1,64], index: 4, kind: input, shape index: {}]   ;;  %s2577_s5 = inlined_call_operand.vmem [shape: f32[4,1,64], index: 5, kind: input, shape index: {}]   ;;  %s2578_s6 = inlined_call_operand.vmem [shape: f32[4,1,64], index: 6, kind: input, shape index: {}]   ;;  %s2579_s7 = inlined_call_operand.vmem [shape: bf16[4,512,64], index: 7, kind: output, shape index: {0}]   ;;  %s2580_s8 = inlined_call_operand.vmem [shape: bf16[4,512,64], index: 8, kind: output, shape index: {1}]   ;;  %s2581_s9 = inlined_call_operand.vmem [shape: bf16[4,512,64], index: 9, kind: output, shape index: {2}]  }
   0x1   :  { %s2158_s11 = smov 0   ;;  %s2160_s12 = smov 0  }
   0x2   :  { %s2162_s13 = smov 0  }
   0x3 LB: > { %s29_s14 = sadd.s32 1, %s2094_s11  ;;  %s32_s15 = sadd.s32 1, %s2098_s12  ;;  %s2102_s13 = sphi %s2162_s13, %s20_s13   ;;  %s2098_s12 = sphi %s2160_s12, %s2585_s12   ;;  %s2094_s11 = sphi %s2158_s11, %s2584_s11   ;;  %s2090_s10 = sphi %s2156_s10, %s2583_s10   ;;  %s2086_s30 = sphi %s2154_s30, %s2582_s30  }
   0x4   : > { %p30_p0 = scmp.ge.s32.totalorder %s29_s14, 4  ;;  %p1660_p1 = scmp.ge.s32.totalorder %s2102_s13, 1 }
   0x5   : > { %p366_p2 = scmp.lt.s32.totalorder %s2102_s13, 17 }
   0x6   : > { %s2587_s14 = smov (%p30_p0, %s29_s14), 0  ;;  %s2589_s15 = smov (!%p30_p0, %s32_s15), %s2098_s12 }
   0x7   : > { %p367_p3 = pnand %p1660_p1, %p366_p2  ;;  %p34_p4 = scmp.ge.s32.totalorder %s2589_s15, 4 }
   0x8   : > { %p456_p5 = scmp.lt.s32.totalorder (!%p367_p3), %s2086_s30, 3  ;;  %s1661_s20 = sshll.u32 (!%p367_p3), %s2090_s10, 4 }
   0x9   : > { %s2591_s15 = smov (%p34_p4, %s2589_s15), 0  ;;  %370 = sbr.rel (%p367_p3) target bundleno = 373 (0x175), region = 48 }
   0xa   : > { %p450_p6 = scmp.lt.s32.totalorder (!%p367_p3), %s1661_s20, 63 }
   0xe   : > { %s2593_s30 = smov (!%p456_p5, %s2086_s30), 3  ;;  %s2595_s20 = smov (!%p450_p6, %s1661_s20), 63  ;;  %vm868_vm0 = vcmask 519168  }
   0xf   : > { %s2189_s16 = sshll.u32 %s2593_s30, 7  ;;  %s1937_s21 = sshll.u32 %s2595_s20, 3 }
  0x10   : > { %s2195_s19 = scalar_lea.vmem %s2573_s1, %s2189_s16  ;;  %s473_s24 = scalar_lea.vmem %s2576_s4, %s2593_s30 }
  0x11   : > { %v1964_v0 = vld [vmem:[%s2195_s19 + $0x38] sm:$0xff]  ;;  %v1963_v2 = vld [vmem:[%s2195_s19 + $0x30] sm:$0xff]  ;;  %v1962_v4 = vld [vmem:[%s2195_s19 + $0x28] sm:$0xff]  ;;  %s2221_s27 = scalar_lea.vmem %s2572_s0, %s1937_s21  ;;  %s2232_s10 = scalar_lea.vmem %s2574_s2, %s2189_s16 }
  0x12   : > { %v1972_v1 = vld [vmem:[%s2195_s19 + $0x78] sm:$0xff]  ;;  %738 = vmatpush.bf16.msra.mxu0 %v1964_v0  ;;  %2005 = vmatpush.bf16.msra.mxu2 %v1964_v0  ;;  %v1971_v3 = vld [vmem:[%s2195_s19 + $0x70] sm:$0xff]  ;;  %v1970_v5 = vld [vmem:[%s2195_s19 + $0x68] sm:$0xff]  ;;  %s479_s22 = scalar_lea.vmem %s2578_s6, %s2593_s30  ;;  %s476_s26 = scalar_lea.vmem %s2577_s5, %s2593_s30 }
  0x13   : > { %787 = vmatpush.bf16.msra.mxu1 %v1972_v1  ;;  %2013 = vmatpush.bf16.msra.mxu3 %v1972_v1  ;;  %v1961_v6 = vld [vmem:[%s2195_s19 + $0x20] sm:$0xff]  ;;  %v1960_v8 = vld [vmem:[%s2195_s19 + $0x18] sm:$0xff]  ;;  %v1959_v10 = vld [vmem:[%s2195_s19 + $0x10] sm:$0xff]  ;;  %s1671_s29 = sshll.u32 %s2593_s30, 6 }
  0x14   : > { %v1969_v7 = vld [vmem:[%s2195_s19 + $0x60] sm:$0xff]  ;;  %v1968_v9 = vld [vmem:[%s2195_s19 + $0x58] sm:$0xff]  ;;  %v1967_v11 = vld [vmem:[%s2195_s19 + $0x50] sm:$0xff] }
  0x15   : > { %v1958_v12 = vld [vmem:[%s2195_s19 + $0x8] sm:$0xff]  ;;  %v1957_v14 = vld [vmem:[%s2195_s19] sm:$0xff]  ;;  %v1980_v24 = vld [vmem:[%s2232_s10 + $0x38] sm:$0xff] }
  0x16   : > { %739 = vmatpush.bf16.msra.mxu0 %v1963_v2  ;;  %2006 = vmatpush.bf16.msra.mxu2 %v1963_v2  ;;  %v1966_v13 = vld [vmem:[%s2195_s19 + $0x48] sm:$0xff]  ;;  %v1965_v15 = vld [vmem:[%s2195_s19 + $0x40] sm:$0xff]  ;;  %v1988_v25 = vld [vmem:[%s2232_s10 + $0x78] sm:$0xff]  ;;  %s2246_s19 = scalar_lea.vmem %s2575_s3, %s2189_s16 }
  0x17   : > { %788 = vmatpush.bf16.msra.mxu1 %v1971_v3  ;;  %2014 = vmatpush.bf16.msra.mxu3 %v1971_v3  ;;  %v1681_v16 = vld [vmem:[%s2221_s27] sm:$0xf]  ;;  %v1942_v17 = vld [vmem:[%s2221_s27 + $0x4] sm:$0xf0]  ;;  %v1941_v20 = vld [vmem:[%s2221_s27 + $0x4] sm:$0xf] }
  0x18   : > { %v1713_v18 = vld [vmem:[%s2221_s27 + $0x40] sm:$0xf]  ;;  %v1950_v19 = vld [vmem:[%s2221_s27 + $0x44] sm:$0xf0]  ;;  %v1683_v21 = vld [vmem:[%s2221_s27 + $0x8] sm:$0xf0]  ;;  %v2248_v26 = vor.u32 %v1942_v17, %v1681_v16 }
  0x19   : > { %v1949_v22 = vld [vmem:[%s2221_s27 + $0x44] sm:$0xf]  ;;  %v1715_v23 = vld [vmem:[%s2221_s27 + $0x48] sm:$0xf0]  ;;  %v2250_v27 = vor.u32 %v1950_v19, %v1713_v18  ;;  %v2252_v28 = vor.u32 %v1941_v20, %v1683_v21  ;;  %v1996_v30 = vld [vmem:[%s2246_s19 + $0x38] sm:$0xff] }
  0x1a   : > { %740 = vmatpush.bf16.msra.mxu0 %v1962_v4  ;;  %2007 = vmatpush.bf16.msra.mxu2 %v1962_v4  ;;  %v2254_v29 = vor.u32 %v1949_v22, %v1715_v23  ;;  %v2004_v31 = vld [vmem:[%s2246_s19 + $0x78] sm:$0xff]  ;;  %v1979_v32 = vld [vmem:[%s2232_s10 + $0x30] sm:$0xff]  ;;  %v1978_v36 = vld [vmem:[%s2232_s10 + $0x28] sm:$0xff] }
  0x1b   : > { %789 = vmatpush.bf16.msra.mxu1 %v1970_v5  ;;  %2015 = vmatpush.bf16.msra.mxu3 %v1970_v5  ;;  %v1987_v33 = vld [vmem:[%s2232_s10 + $0x70] sm:$0xff]  ;;  %v1986_v37 = vld [vmem:[%s2232_s10 + $0x68] sm:$0xff]  ;;  %v1977_v41 = vld [vmem:[%s2232_s10 + $0x20] sm:$0xff] }
  0x1c   : > { %v1995_v34 = vld [vmem:[%s2246_s19 + $0x30] sm:$0xff]  ;;  %v1994_v38 = vld [vmem:[%s2246_s19 + $0x28] sm:$0xff]  ;;  %v1985_v42 = vld [vmem:[%s2232_s10 + $0x60] sm:$0xff] }
  0x1d   : > { %v2003_v35 = vld [vmem:[%s2246_s19 + $0x70] sm:$0xff]  ;;  %v2002_v39 = vld [vmem:[%s2246_s19 + $0x68] sm:$0xff]  ;;  %v1944_v43 = vld [vmem:[%s2221_s27 + $0x14] sm:$0xf0] }
  0x1e   : > { %741 = vmatpush.bf16.msra.mxu0 %v1961_v6  ;;  %2008 = vmatpush.bf16.msra.mxu2 %v1961_v6  ;;  %v1689_v40 = vld [vmem:[%s2221_s27 + $0x10] sm:$0xf]  ;;  %v1952_v45 = vld [vmem:[%s2221_s27 + $0x54] sm:$0xf0]  ;;  %v1943_v46 = vld [vmem:[%s2221_s27 + $0x14] sm:$0xf] }
  0x1f   : > { %790 = vmatpush.bf16.msra.mxu1 %v1969_v7  ;;  %2016 = vmatpush.bf16.msra.mxu3 %v1969_v7  ;;  %v1721_v44 = vld [vmem:[%s2221_s27 + $0x50] sm:$0xf]  ;;  %v1691_v47 = vld [vmem:[%s2221_s27 + $0x18] sm:$0xf0]  ;;  %v1951_v48 = vld [vmem:[%s2221_s27 + $0x54] sm:$0xf]  ;;  %v2284_v54 = vor.u32 %v1944_v43, %v1689_v40 }
  0x20   : > { %v1723_v49 = vld [vmem:[%s2221_s27 + $0x58] sm:$0xf0]  ;;  %v1993_v50 = vld [vmem:[%s2246_s19 + $0x20] sm:$0xff]  ;;  %v2286_v55 = vor.u32 %v1952_v45, %v1721_v44  ;;  %v2288_v56 = vor.u32 %v1943_v46, %v1691_v47  ;;  %v1975_v60 = vld [vmem:[%s2232_s10 + $0x10] sm:$0xff] }
  0x21   : > { %v2001_v51 = vld [vmem:[%s2246_s19 + $0x60] sm:$0xff]  ;;  %v1976_v52 = vld [vmem:[%s2232_s10 + $0x18] sm:$0xff]  ;;  %v2290_v57 = vor.u32 %v1951_v48, %v1723_v49  ;;  %v1983_v61 = vld [vmem:[%s2232_s10 + $0x50] sm:$0xff] }
  0x22   : > { %742 = vmatpush.bf16.msra.mxu0 %v1960_v8  ;;  %2009 = vmatpush.bf16.msra.mxu2 %v1960_v8  ;;  %v1984_v53 = vld [vmem:[%s2232_s10 + $0x58] sm:$0xff]  ;;  %v1991_v62 = vld [vmem:[%s2246_s19 + $0x10] sm:$0xff]  ;;  %v1974_v0 = vld [vmem:[%s2232_s10 + $0x8] sm:$0xff] }
  0x23   : > { %791 = vmatpush.bf16.msra.mxu1 %v1968_v9  ;;  %2017 = vmatpush.bf16.msra.mxu3 %v1968_v9  ;;  %v1992_v58 = vld [vmem:[%s2246_s19 + $0x18] sm:$0xff]  ;;  %v1999_v63 = vld [vmem:[%s2246_s19 + $0x50] sm:$0xff]  ;;  %v1982_v1 = vld [vmem:[%s2232_s10 + $0x48] sm:$0xff] }
  0x24   : > { %v2000_v59 = vld [vmem:[%s2246_s19 + $0x58] sm:$0xff]  ;;  %v1990_v2 = vld [vmem:[%s2246_s19 + $0x8] sm:$0xff]  ;;  %v1697_v4 = vld [vmem:[%s2221_s27 + $0x20] sm:$0xf] }
  0x25   : > { %v1998_v3 = vld [vmem:[%s2246_s19 + $0x48] sm:$0xff]  ;;  %v1973_v5 = vld [vmem:[%s2232_s10] sm:$0xff]  ;;  %v1705_v20 = vld [vmem:[%s2221_s27 + $0x30] sm:$0xf] }
  0x26   : > { %743 = vmatpush.bf16.msra.mxu0 %v1959_v10  ;;  %2010 = vmatpush.bf16.msra.mxu2 %v1959_v10  ;;  %v1981_v6 = vld [vmem:[%s2232_s10 + $0x40] sm:$0xff]  ;;  %v1946_v7 = vld [vmem:[%s2221_s27 + $0x24] sm:$0xf0]  ;;  %v1948_v21 = vld [vmem:[%s2221_s27 + $0x34] sm:$0xf0]  ;;  %s486_s10 = sadd.s32 %s1671_s29, %s2595_s20 }
  0x27   : > { %792 = vmatpush.bf16.msra.mxu1 %v1967_v11  ;;  %2018 = vmatpush.bf16.msra.mxu3 %v1967_v11  ;;  %v1729_v8 = vld [vmem:[%s2221_s27 + $0x60] sm:$0xf]  ;;  %v1954_v9 = vld [vmem:[%s2221_s27 + $0x64] sm:$0xf0]  ;;  %v1945_v10 = vld [vmem:[%s2221_s27 + $0x24] sm:$0xf]  ;;  %v1698_v16 = vor.u32 %v1946_v7, %v1697_v4 }
  0x28   : > { %v1699_v11 = vld [vmem:[%s2221_s27 + $0x28] sm:$0xf0]  ;;  %v2318_v17 = vor.u32 %v1954_v9, %v1729_v8  ;;  %v1737_v22 = vld [vmem:[%s2221_s27 + $0x70] sm:$0xf]  ;;  %v1956_v23 = vld [vmem:[%s2221_s27 + $0x74] sm:$0xf0] }
  0x29   : > { %v1702_v18 = vor.u32 %v1945_v10, %v1699_v11  ;;  %s2364_s17 = sshll.u32 %s486_s10, 2 }
  0x2a   : > { %744 = vmatpush.bf16.msra.mxu0 %v1958_v12  ;;  %2011 = vmatpush.bf16.msra.mxu2 %v1958_v12  ;;  %v1953_v12 = vld [vmem:[%s2221_s27 + $0x64] sm:$0xf]  ;;  %s2374_s20 = scalar_lea.vmem %s2579_s7, %s2364_s17  ;;  %s2464_s28 = scalar_lea.vmem %s2580_s8, %s2364_s17 }
  0x2b   : > { %793 = vmatpush.bf16.msra.mxu1 %v1966_v13  ;;  %2019 = vmatpush.bf16.msra.mxu3 %v1966_v13  ;;  %v1731_v13 = vld [vmem:[%s2221_s27 + $0x68] sm:$0xf0] }
  0x2c   : > { %v2320_v19 = vor.u32 %v1953_v12, %v1731_v13 }
  0x2e   : > { %745 = vmatpush.bf16.msra.mxu0 %v1957_v14  ;;  %2012 = vmatpush.bf16.msra.mxu2 %v1957_v14  ;;  %v1989_v14 = vld [vmem:[%s2246_s19] sm:$0xff] }
  0x2f   : > { %794 = vmatpush.bf16.msra.mxu1 %v1965_v15  ;;  %2020 = vmatpush.bf16.msra.mxu3 %v1965_v15  ;;  %v1997_v15 = vld [vmem:[%s2246_s19 + $0x40] sm:$0xff] }
  0x31   : > { %746 = vmatmul.bf16.vlgmr.msra.gmra.mxu0 %v2248_v26  ;;  %766 = vmatmul.bf16.vlgmr.msra.gmra.mxu2 %v2250_v27 }
  0x32   : > { %1017 = vmatpush.bf16.msrb.mxu2 %v1980_v24  ;;  %795 = vmatmul.bf16.vlgmr.msra.gmra.mxu1 %v2252_v28  ;;  %v1947_v24 = vld [vmem:[%s2221_s27 + $0x34] sm:$0xf] }
  0x33   : > { %1066 = vmatpush.bf16.msrb.mxu3 %v1988_v25  ;;  %1279 = vmatpush.bf16.msrb.mxu0 %v1996_v30  ;;  %v1707_v25 = vld [vmem:[%s2221_s27 + $0x38] sm:$0xf0]  ;;  %v1955_v30 = vld [vmem:[%s2221_s27 + $0x74] sm:$0xf] }
  0x34   : > { %815 = vmatmul.bf16.vlgmr.msra.gmra.mxu3 %v2254_v29  ;;  %1328 = vmatpush.bf16.msrb.mxu1 %v2004_v31  ;;  %v1739_v31 = vld [vmem:[%s2221_s27 + $0x78] sm:$0xf0]  ;;  %s2452_s27 = scalar_lea.vmem %s2581_s9, %s2364_s17 }
  0x36   : > { %1018 = vmatpush.bf16.msrb.mxu2 %v1979_v32  ;;  %v1706_v32 = vor.u32 %v1948_v21, %v1705_v20 }
  0x37   : > { %1067 = vmatpush.bf16.msrb.mxu3 %v1987_v33  ;;  %1280 = vmatpush.bf16.msrb.mxu0 %v1995_v34  ;;  %v2332_v33 = vor.u32 %v1956_v23, %v1737_v22  ;;  %v1710_v34 = vor.u32 %v1947_v24, %v1707_v25 }
  0x38   : > { %1329 = vmatpush.bf16.msrb.mxu1 %v2003_v35  ;;  %v2334_v35 = vor.u32 %v1955_v30, %v1739_v31 }
  0x3a   : > { %1019 = vmatpush.bf16.msrb.mxu2 %v1978_v36 }
  0x3b   : > { %1068 = vmatpush.bf16.msrb.mxu3 %v1986_v37  ;;  %1281 = vmatpush.bf16.msrb.mxu0 %v1994_v38 }
  0x3c   : > { %1330 = vmatpush.bf16.msrb.mxu1 %v2002_v39 }
  0x3e   : > { %1020 = vmatpush.bf16.msrb.mxu2 %v1977_v41 }
  0x3f   : > { %1069 = vmatpush.bf16.msrb.mxu3 %v1985_v42  ;;  %1282 = vmatpush.bf16.msrb.mxu0 %v1993_v50 }
  0x40   : > { %1331 = vmatpush.bf16.msrb.mxu1 %v2001_v51 }
  0x41   : > { %751 = vmatmul.bf16.gmra.mxu0 %v2284_v54  ;;  %771 = vmatmul.bf16.gmra.mxu2 %v2286_v55 }
  0x42   : > { %1021 = vmatpush.bf16.msrb.mxu2 %v1976_v52  ;;  %800 = vmatmul.bf16.gmra.mxu1 %v2288_v56 }
  0x43   : > { %1070 = vmatpush.bf16.msrb.mxu3 %v1984_v53  ;;  %1283 = vmatpush.bf16.msrb.mxu0 %v1992_v58 }
  0x44   : > { %820 = vmatmul.bf16.gmra.mxu3 %v2290_v57  ;;  %1332 = vmatpush.bf16.msrb.mxu1 %v2000_v59 }
  0x46   : > { %1022 = vmatpush.bf16.msrb.mxu2 %v1975_v60 }
  0x47   : > { %1071 = vmatpush.bf16.msrb.mxu3 %v1983_v61  ;;  %1284 = vmatpush.bf16.msrb.mxu0 %v1991_v62 }
  0x48   : > { %1333 = vmatpush.bf16.msrb.mxu1 %v1999_v63 }
  0x4a   : > { %1023 = vmatpush.bf16.msrb.mxu2 %v1974_v0 }
  0x4b   : > { %1072 = vmatpush.bf16.msrb.mxu3 %v1982_v1  ;;  %1285 = vmatpush.bf16.msrb.mxu0 %v1990_v2 }
  0x4c   : > { %1334 = vmatpush.bf16.msrb.mxu1 %v1998_v3 }
  0x4e   : > { %1024 = vmatpush.bf16.msrb.mxu2 %v1973_v5 }
  0x4f   : > { %1073 = vmatpush.bf16.msrb.mxu3 %v1981_v6  ;;  %1286 = vmatpush.bf16.msrb.mxu0 %v1989_v14 }
  0x50   : > { %1335 = vmatpush.bf16.msrb.mxu1 %v1997_v15 }
  0x51   : > { %756 = vmatmul.bf16.gmra.mxu0 %v1698_v16  ;;  %776 = vmatmul.bf16.gmra.mxu2 %v2318_v17 }
  0x52   : > { %805 = vmatmul.bf16.gmra.mxu1 %v1702_v18 }
  0x54   : > { %825 = vmatmul.bf16.gmra.mxu3 %v2320_v19 }
  0x61   : > { %761 = vmatmul.bf16.gmra.mxu0 %v1706_v32  ;;  %781 = vmatmul.bf16.gmra.mxu2 %v2332_v33 }
  0x62   : > { %810 = vmatmul.bf16.gmra.mxu1 %v1710_v34 }
  0x64   : > { %830 = vmatmul.bf16.gmra.mxu3 %v2334_v35 }
  0x71   : > { %1025 = vmatmul.bf16.vlgmr.msrb.gmra.mxu2 %v2248_v26  ;;  %1287 = vmatmul.bf16.vlgmr.msrb.gmra.mxu0 %v2248_v26  ;;  %v2359_v26 = vld [vmem:[%s473_s24] ss:$0 sm:$0xff] }
  0x72   : > { %1336 = vmatmul.bf16.vlgmr.msrb.gmra.mxu1 %v2252_v28 }
  0x74   : > { %1074 = vmatmul.bf16.vlgmr.msrb.gmra.mxu3 %v2252_v28 }
  0x81   : > { %1030 = vmatmul.bf16.gmra.mxu2 %v2284_v54  ;;  %1292 = vmatmul.bf16.gmra.mxu0 %v2284_v54 }
  0x82   : > { %1341 = vmatmul.bf16.gmra.mxu1 %v2288_v56 }
  0x84   : > { %1079 = vmatmul.bf16.gmra.mxu3 %v2288_v56 }
  0x91   : > { %1035 = vmatmul.bf16.gmra.mxu2 %v1698_v16  ;;  %1297 = vmatmul.bf16.gmra.mxu0 %v1698_v16 }
  0x92   : > { %1346 = vmatmul.bf16.gmra.mxu1 %v1702_v18 }
  0x94   : > { %1084 = vmatmul.bf16.gmra.mxu3 %v1702_v18 }
  0xa1   : > { %1040 = vmatmul.bf16.gmra.mxu2 %v1706_v32  ;;  %1302 = vmatmul.bf16.gmra.mxu0 %v1706_v32 }
  0xa2   : > { %1351 = vmatmul.bf16.gmra.mxu1 %v1710_v34 }
  0xa4   : > { %1089 = vmatmul.bf16.gmra.mxu3 %v1710_v34 }
  0xae   : > { %v747_v28 = vpop.f32.mrf.mxu0 }
  0xaf   : > { %v748_v36 = vadd.f32 %v2359_v26, %v747_v28  ;;  %v796_v37 = vpop.f32.mrf.mxu1 }
  0xb1   : > { %v797_v38 = vadd.f32 %v796_v37, %v748_v36  ;;  %1045 = vmatmul.bf16.gmra.mxu2 %v2250_v27  ;;  %1307 = vmatmul.bf16.gmra.mxu0 %v2250_v27 }
  0xb2   : > { %1356 = vmatmul.bf16.gmra.mxu1 %v2254_v29 }
  0xb3   : > { %v836_v39 = vmul.f32 0.125, %v797_v38 }
  0xb4   : > { %1094 = vmatmul.bf16.gmra.mxu3 %v2254_v29  ;;  %v767_v40 = vpop.f32.mrf.mxu2 }
  0xb5   : > { %v852_v41 = vpack.c.bf16 %v836_v39, %v836_v39  ;;  %v768_v42 = vadd.f32 %v2359_v26, %v767_v40 }
  0xb6   : > { %v749_v27 = vpop.f32.mrf.mxu0 }
  0xb7   : > { %v816_v43 = vpop.f32.mrf.mxu3  ;;  %869 = vst.msk [vmem:[%s2374_s20] sm:$0xf] %vm868_vm0, %v852_v41  ;;  %v750_v29 = vadd.f32 %v2359_v26, %v749_v27  ;;  %v798_v45 = vpop.f32.mrf.mxu1 }
  0xb8   : > { %v817_v44 = vadd.f32 %v816_v43, %v768_v42 }
  0xb9   : > { %v799_v47 = vadd.f32 %v798_v45, %v750_v29 }
  0xba   : > { %v844_v46 = vmul.f32 0.125, %v817_v44 }
  0xbb   : > { %v837_v49 = vmul.f32 0.125, %v799_v47 }
  0xbc   : > { %v860_v48 = vpack.c.bf16 %v844_v46, %v844_v46  ;;  %v769_v50 = vpop.f32.mrf.mxu2 }
  0xbd   : > { %v853_v51 = vpack.c.bf16 %v837_v49, %v837_v49  ;;  %v770_v52 = vadd.f32 %v2359_v26, %v769_v50 }
  0xbe   : > { %877 = vst.msk [vmem:[%s2374_s20 + $0x20] sm:$0xf] %vm868_vm0, %v860_v48  ;;  %v752_v54 = vpop.f32.mrf.mxu0 }
  0xbf   : > { %v818_v53 = vpop.f32.mrf.mxu3  ;;  %870 = vst.msk [vmem:[%s2374_s20 + $0x4] sm:$0xf] %vm868_vm0, %v853_v51  ;;  %v753_v58 = vadd.f32 %v2359_v26, %v752_v54  ;;  %v801_v59 = vpop.f32.mrf.mxu1 }
  0xc0   : > { %v819_v56 = vadd.f32 %v818_v53, %v770_v52 }
  0xc1   : > { %v802_v61 = vadd.f32 %v801_v59, %v753_v58  ;;  %1050 = vmatmul.bf16.gmra.mxu2 %v2286_v55  ;;  %1312 = vmatmul.bf16.gmra.mxu0 %v2286_v55 }
  0xc2   : > { %v845_v60 = vmul.f32 0.125, %v819_v56  ;;  %1361 = vmatmul.bf16.gmra.mxu1 %v2290_v57 }
  0xc3   : > { %v838_v63 = vmul.f32 0.125, %v802_v61  ;;  %v2433_v61 = vld [vmem:[%s479_s22] ss:$0 sm:$0xff] }
  0xc4   : > { %1099 = vmatmul.bf16.gmra.mxu3 %v2290_v57  ;;  %v861_v62 = vpack.c.bf16 %v845_v60, %v845_v60  ;;  %v772_v0 = vpop.f32.mrf.mxu2 }
  0xc5   : > { %v854_v1 = vpack.c.bf16 %v838_v63, %v838_v63  ;;  %v773_v2 = vadd.f32 %v2359_v26, %v772_v0 }
  0xc6   : > { %878 = vst.msk [vmem:[%s2374_s20 + $0x24] sm:$0xf] %vm868_vm0, %v861_v62  ;;  %v754_v4 = vpop.f32.mrf.mxu0 }
  0xc7   : > { %v821_v3 = vpop.f32.mrf.mxu3  ;;  %871 = vst.msk [vmem:[%s2374_s20 + $0x8] sm:$0xf] %vm868_vm0, %v854_v1  ;;  %v755_v55 = vadd.f32 %v2359_v26, %v754_v4  ;;  %v803_v6 = vpop.f32.mrf.mxu1 }
  0xc8   : > { %v822_v5 = vadd.f32 %v821_v3, %v773_v2 }
  0xc9   : > { %v804_v57 = vadd.f32 %v803_v6, %v755_v55 }
  0xca   : > { %v846_v7 = vmul.f32 0.125, %v822_v5 }
  0xcb   : > { %v839_v9 = vmul.f32 0.125, %v804_v57 }
  0xcc   : > { %v862_v8 = vpack.c.bf16 %v846_v7, %v846_v7  ;;  %v774_v10 = vpop.f32.mrf.mxu2  ;;  %v2446_v7 = vld [vmem:[%s476_s26] ss:$0 sm:$0xff] }
  0xcd   : > { %v855_v11 = vpack.c.bf16 %v839_v9, %v839_v9  ;;  %v775_v12 = vadd.f32 %v2359_v26, %v774_v10 }
  0xce   : > { %879 = vst.msk [vmem:[%s2374_s20 + $0x28] sm:$0xf] %vm868_vm0, %v862_v8  ;;  %v757_v14 = vpop.f32.mrf.mxu0 }
  0xcf   : > { %v823_v13 = vpop.f32.mrf.mxu3  ;;  %872 = vst.msk [vmem:[%s2374_s20 + $0xc] sm:$0xf] %vm868_vm0, %v855_v11  ;;  %v758_v16 = vadd.f32 %v2359_v26, %v757_v14  ;;  %v806_v18 = vpop.f32.mrf.mxu1 }
  0xd0   : > { %v824_v15 = vadd.f32 %v823_v13, %v775_v12 }
  0xd1   : > { %v807_v21 = vadd.f32 %v806_v18, %v758_v16  ;;  %1055 = vmatmul.bf16.gmra.mxu2 %v2318_v17  ;;  %1317 = vmatmul.bf16.gmra.mxu0 %v2318_v17 }
  0xd2   : > { %v847_v20 = vmul.f32 0.125, %v824_v15  ;;  %1366 = vmatmul.bf16.gmra.mxu1 %v2320_v19 }
  0xd3   : > { %v840_v23 = vmul.f32 0.125, %v807_v21 }
  0xd4   : > { %1104 = vmatmul.bf16.gmra.mxu3 %v2320_v19  ;;  %v863_v22 = vpack.c.bf16 %v847_v20, %v847_v20  ;;  %v777_v24 = vpop.f32.mrf.mxu2 }
  0xd5   : > { %v856_v25 = vpack.c.bf16 %v840_v23, %v840_v23  ;;  %v778_v30 = vadd.f32 %v2359_v26, %v777_v24 }
  0xd6   : > { %880 = vst.msk [vmem:[%s2374_s20 + $0x2c] sm:$0xf] %vm868_vm0, %v863_v22  ;;  %v759_v32 = vpop.f32.mrf.mxu0 }
  0xd7   : > { %v826_v31 = vpop.f32.mrf.mxu3  ;;  %873 = vst.msk [vmem:[%s2374_s20 + $0x10] sm:$0xf] %vm868_vm0, %v856_v25  ;;  %v760_v17 = vadd.f32 %v2359_v26, %v759_v32  ;;  %v808_v28 = vpop.f32.mrf.mxu1 }
  0xd8   : > { %v827_v34 = vadd.f32 %v826_v31, %v778_v30 }
  0xd9   : > { %v809_v19 = vadd.f32 %v808_v28, %v760_v17 }
  0xda   : > { %v848_v36 = vmul.f32 0.125, %v827_v34 }
  0xdb   : > { %v841_v38 = vmul.f32 0.125, %v809_v19 }
  0xdc   : > { %v864_v37 = vpack.c.bf16 %v848_v36, %v848_v36  ;;  %v779_v39 = vpop.f32.mrf.mxu2 }
  0xdd   : > { %v857_v40 = vpack.c.bf16 %v841_v38, %v841_v38  ;;  %v780_v41 = vadd.f32 %v2359_v26, %v779_v39 }
  0xde   : > { %881 = vst.msk [vmem:[%s2374_s20 + $0x30] sm:$0xf] %vm868_vm0, %v864_v37  ;;  %v762_v43 = vpop.f32.mrf.mxu0 }
  0xdf   : > { %v828_v42 = vpop.f32.mrf.mxu3  ;;  %874 = vst.msk [vmem:[%s2374_s20 + $0x14] sm:$0xf] %vm868_vm0, %v857_v40  ;;  %v763_v44 = vadd.f32 %v2359_v26, %v762_v43  ;;  %v811_v29 = vpop.f32.mrf.mxu1 }
  0xe0   : > { %v829_v27 = vadd.f32 %v828_v42, %v780_v41 }
  0xe1   : > { %v812_v46 = vadd.f32 %v811_v29, %v763_v44  ;;  %1060 = vmatmul.bf16.gmra.mxu2 %v2332_v33  ;;  %1322 = vmatmul.bf16.gmra.mxu0 %v2332_v33 }
  0xe2   : > { %v849_v45 = vmul.f32 0.125, %v829_v27  ;;  %1371 = vmatmul.bf16.gmra.mxu1 %v2334_v35 }
  0xe3   : > { %v842_v48 = vmul.f32 0.125, %v812_v46 }
  0xe4   : > { %1109 = vmatmul.bf16.gmra.mxu3 %v2334_v35  ;;  %v865_v47 = vpack.c.bf16 %v849_v45, %v849_v45  ;;  %v782_v49 = vpop.f32.mrf.mxu2 }
  0xe5   : > { %v858_v50 = vpack.c.bf16 %v842_v48, %v842_v48  ;;  %v783_v51 = vadd.f32 %v2359_v26, %v782_v49 }
  0xe6   : > { %882 = vst.msk [vmem:[%s2374_s20 + $0x34] sm:$0xf] %vm868_vm0, %v865_v47  ;;  %v764_v53 = vpop.f32.mrf.mxu0 }
  0xe7   : > { %v831_v52 = vpop.f32.mrf.mxu3  ;;  %875 = vst.msk [vmem:[%s2374_s20 + $0x18] sm:$0xf] %vm868_vm0, %v858_v50  ;;  %v765_v54 = vadd.f32 %v2359_v26, %v764_v53  ;;  %v813_v56 = vpop.f32.mrf.mxu1 }
  0xe8   : > { %v832_v33 = vadd.f32 %v831_v52, %v783_v51 }
  0xe9   : > { %v814_v58 = vadd.f32 %v813_v56, %v765_v54 }
  0xea   : > { %v850_v35 = vmul.f32 0.125, %v832_v33 }
  0xeb   : > { %v843_v60 = vmul.f32 0.125, %v814_v58 }
  0xec   : > { %v866_v59 = vpack.c.bf16 %v850_v35, %v850_v35  ;;  %v784_v62 = vpop.f32.mrf.mxu2 }
  0xed   : > { %v859_v63 = vpack.c.bf16 %v843_v60, %v843_v60  ;;  %v785_v0 = vadd.f32 %v2359_v26, %v784_v62 }
  0xee   : > { %883 = vst.msk [vmem:[%s2374_s20 + $0x38] sm:$0xf] %vm868_vm0, %v866_v59  ;;  %v1288_v2 = vpop.f32.mrf.mxu0 }
  0xef   : > { %v833_v1 = vpop.f32.mrf.mxu3  ;;  %876 = vst.msk [vmem:[%s2374_s20 + $0x1c] sm:$0xf] %vm868_vm0, %v859_v63  ;;  %v1289_v4 = vadd.f32 %v2433_v61, %v1288_v2  ;;  %v1337_v5 = vpop.f32.mrf.mxu1 }
  0xf0   : > { %v834_v3 = vadd.f32 %v833_v1, %v785_v0 }
  0xf1   : > { %v1338_v6 = vadd.f32 %v1337_v5, %v1289_v4 }
  0xf2   : > { %v851_v55 = vmul.f32 0.125, %v834_v3 }
  0xf3   : > { %v1377_v26 = vpack.c.bf16 %v1338_v6, %v1338_v6 }
  0xf4   : > { %v867_v57 = vpack.c.bf16 %v851_v55, %v851_v55  ;;  %v1026_v8 = vpop.f32.mrf.mxu2 }
  0xf5   : > { %v1027_v9 = vadd.f32 %v2446_v7, %v1026_v8  ;;  %1393 = vst.msk [vmem:[%s2452_s27] sm:$0xf] %vm868_vm0, %v1377_v26 }
  0xf6   : > { %884 = vst.msk [vmem:[%s2374_s20 + $0x3c] sm:$0xf] %vm868_vm0, %v867_v57  ;;  %v1290_v11 = vpop.f32.mrf.mxu0 }
  0xf7   : > { %v1075_v10 = vpop.f32.mrf.mxu3  ;;  %v1291_v13 = vadd.f32 %v2433_v61, %v1290_v11  ;;  %v1339_v14 = vpop.f32.mrf.mxu1 }
  0xf8   : > { %v1076_v12 = vadd.f32 %v1075_v10, %v1027_v9 }
  0xf9   : > { %v1340_v16 = vadd.f32 %v1339_v14, %v1291_v13 }
  0xfa   : > { %v1115_v15 = vpack.c.bf16 %v1076_v12, %v1076_v12 }
  0xfb   : > { %v1378_v18 = vpack.c.bf16 %v1340_v16, %v1340_v16 }
  0xfc   : > { %1131 = vst.msk [vmem:[%s2464_s28] sm:$0xf] %vm868_vm0, %v1115_v15  ;;  %v1028_v20 = vpop.f32.mrf.mxu2 }
  0xfd   : > { %1394 = vst.msk [vmem:[%s2452_s27 + $0x4] sm:$0xf] %vm868_vm0, %v1378_v18  ;;  %v1029_v21 = vadd.f32 %v2446_v7, %v1028_v20 }
  0xfe   : > { %v1293_v23 = vpop.f32.mrf.mxu0 }
  0xff   : > { %v1077_v22 = vpop.f32.mrf.mxu3  ;;  %v1294_v25 = vadd.f32 %v2433_v61, %v1293_v23  ;;  %v1342_v30 = vpop.f32.mrf.mxu1 }
 0x100   : > { %v1078_v24 = vadd.f32 %v1077_v22, %v1029_v21 }
 0x101   : > { %v1343_v32 = vadd.f32 %v1342_v30, %v1294_v25 }
 0x102   : > { %v1116_v31 = vpack.c.bf16 %v1078_v24, %v1078_v24 }
 0x103   : > { %v1379_v34 = vpack.c.bf16 %v1343_v32, %v1343_v32 }
 0x104   : > { %1132 = vst.msk [vmem:[%s2464_s28 + $0x4] sm:$0xf] %vm868_vm0, %v1116_v31  ;;  %v1031_v17 = vpop.f32.mrf.mxu2 }
 0x105   : > { %1395 = vst.msk [vmem:[%s2452_s27 + $0x8] sm:$0xf] %vm868_vm0, %v1379_v34  ;;  %v1032_v28 = vadd.f32 %v2446_v7, %v1031_v17 }
 0x106   : > { %v1295_v19 = vpop.f32.mrf.mxu0 }
 0x107   : > { %v1080_v36 = vpop.f32.mrf.mxu3  ;;  %v1296_v38 = vadd.f32 %v2433_v61, %v1295_v19  ;;  %v1344_v39 = vpop.f32.mrf.mxu1 }
 0x108   : > { %v1081_v37 = vadd.f32 %v1080_v36, %v1032_v28 }
 0x109   : > { %v1345_v41 = vadd.f32 %v1344_v39, %v1296_v38 }
 0x10a   : > { %v1117_v40 = vpack.c.bf16 %v1081_v37, %v1081_v37 }
 0x10b   : > { %v1380_v42 = vpack.c.bf16 %v1345_v41, %v1345_v41 }
 0x10c   : > { %1133 = vst.msk [vmem:[%s2464_s28 + $0x8] sm:$0xf] %vm868_vm0, %v1117_v40  ;;  %v1033_v43 = vpop.f32.mrf.mxu2 }
 0x10d   : > { %1396 = vst.msk [vmem:[%s2452_s27 + $0xc] sm:$0xf] %vm868_vm0, %v1380_v42  ;;  %v1034_v27 = vadd.f32 %v2446_v7, %v1033_v43 }
 0x10e   : > { %v1298_v29 = vpop.f32.mrf.mxu0 }
 0x10f   : > { %v1082_v44 = vpop.f32.mrf.mxu3  ;;  %v1299_v46 = vadd.f32 %v2433_v61, %v1298_v29  ;;  %v1347_v47 = vpop.f32.mrf.mxu1 }
 0x110   : > { %v1083_v45 = vadd.f32 %v1082_v44, %v1034_v27 }
 0x111   : > { %v1348_v49 = vadd.f32 %v1347_v47, %v1299_v46 }
 0x112   : > { %v1118_v48 = vpack.c.bf16 %v1083_v45, %v1083_v45 }
 0x113   : > { %v1381_v50 = vpack.c.bf16 %v1348_v49, %v1348_v49 }
 0x114   : > { %1134 = vst.msk [vmem:[%s2464_s28 + $0xc] sm:$0xf] %vm868_vm0, %v1118_v48  ;;  %v1036_v51 = vpop.f32.mrf.mxu2 }
 0x115   : > { %1397 = vst.msk [vmem:[%s2452_s27 + $0x10] sm:$0xf] %vm868_vm0, %v1381_v50  ;;  %v1037_v52 = vadd.f32 %v2446_v7, %v1036_v51 }
 0x116   : > { %v1300_v33 = vpop.f32.mrf.mxu0 }
 0x117   : > { %v1085_v53 = vpop.f32.mrf.mxu3  ;;  %v1301_v56 = vadd.f32 %v2433_v61, %v1300_v33  ;;  %v1349_v35 = vpop.f32.mrf.mxu1 }
 0x118   : > { %v1086_v54 = vadd.f32 %v1085_v53, %v1037_v52 }
 0x119   : > { %v1350_v59 = vadd.f32 %v1349_v35, %v1301_v56 }
 0x11a   : > { %v1119_v58 = vpack.c.bf16 %v1086_v54, %v1086_v54 }
 0x11b   : > { %v1382_v60 = vpack.c.bf16 %v1350_v59, %v1350_v59 }
 0x11c   : > { %1135 = vst.msk [vmem:[%s2464_s28 + $0x10] sm:$0xf] %vm868_vm0, %v1119_v58  ;;  %v1038_v62 = vpop.f32.mrf.mxu2 }
 0x11d   : > { %1398 = vst.msk [vmem:[%s2452_s27 + $0x14] sm:$0xf] %vm868_vm0, %v1382_v60  ;;  %v1039_v63 = vadd.f32 %v2446_v7, %v1038_v62 }
 0x11e   : > { %v1303_v1 = vpop.f32.mrf.mxu0 }
 0x11f   : > { %v1087_v0 = vpop.f32.mrf.mxu3  ;;  %v1304_v3 = vadd.f32 %v2433_v61, %v1303_v1  ;;  %v1352_v4 = vpop.f32.mrf.mxu1 }
 0x120   : > { %v1088_v2 = vadd.f32 %v1087_v0, %v1039_v63 }
 0x121   : > { %v1353_v55 = vadd.f32 %v1352_v4, %v1304_v3 }
 0x122   : > { %v1120_v5 = vpack.c.bf16 %v1088_v2, %v1088_v2 }
 0x123   : > { %v1383_v6 = vpack.c.bf16 %v1353_v55, %v1353_v55 }
 0x124   : > { %1136 = vst.msk [vmem:[%s2464_s28 + $0x14] sm:$0xf] %vm868_vm0, %v1120_v5  ;;  %v1041_v57 = vpop.f32.mrf.mxu2 }
 0x125   : > { %1399 = vst.msk [vmem:[%s2452_s27 + $0x18] sm:$0xf] %vm868_vm0, %v1383_v6  ;;  %v1042_v26 = vadd.f32 %v2446_v7, %v1041_v57 }
 0x126   : > { %v1305_v9 = vpop.f32.mrf.mxu0 }
 0x127   : > { %v1090_v8 = vpop.f32.mrf.mxu3  ;;  %v1306_v11 = vadd.f32 %v2433_v61, %v1305_v9  ;;  %v1354_v12 = vpop.f32.mrf.mxu1 }
 0x128   : > { %v1091_v10 = vadd.f32 %v1090_v8, %v1042_v26 }
 0x129   : > { %v1355_v14 = vadd.f32 %v1354_v12, %v1306_v11 }
 0x12a   : > { %v1121_v13 = vpack.c.bf16 %v1091_v10, %v1091_v10 }
 0x12b   : > { %v1384_v15 = vpack.c.bf16 %v1355_v14, %v1355_v14 }
 0x12c   : > { %1137 = vst.msk [vmem:[%s2464_s28 + $0x18] sm:$0xf] %vm868_vm0, %v1121_v13  ;;  %v1043_v16 = vpop.f32.mrf.mxu2 }
 0x12d   : > { %1400 = vst.msk [vmem:[%s2452_s27 + $0x1c] sm:$0xf] %vm868_vm0, %v1384_v15  ;;  %v1044_v18 = vadd.f32 %v2446_v7, %v1043_v16 }
 0x12e   : > { %v1308_v21 = vpop.f32.mrf.mxu0 }
 0x12f   : > { %v1092_v20 = vpop.f32.mrf.mxu3  ;;  %v1309_v23 = vadd.f32 %v2433_v61, %v1308_v21  ;;  %v1357_v24 = vpop.f32.mrf.mxu1 }
 0x130   : > { %v1093_v22 = vadd.f32 %v1092_v20, %v1044_v18 }
 0x131   : > { %v1358_v30 = vadd.f32 %v1357_v24, %v1309_v23 }
 0x132   : > { %v1122_v25 = vpack.c.bf16 %v1093_v22, %v1093_v22 }
 0x133   : > { %v1385_v31 = vpack.c.bf16 %v1358_v30, %v1358_v30 }
 0x134   : > { %1138 = vst.msk [vmem:[%s2464_s28 + $0x1c] sm:$0xf] %vm868_vm0, %v1122_v25  ;;  %v1046_v32 = vpop.f32.mrf.mxu2 }
 0x135   : > { %1401 = vst.msk [vmem:[%s2452_s27 + $0x20] sm:$0xf] %vm868_vm0, %v1385_v31  ;;  %v1047_v34 = vadd.f32 %v2446_v7, %v1046_v32 }
 0x136   : > { %v1310_v28 = vpop.f32.mrf.mxu0 }
 0x137   : > { %v1095_v17 = vpop.f32.mrf.mxu3  ;;  %v1311_v19 = vadd.f32 %v2433_v61, %v1310_v28  ;;  %v1359_v37 = vpop.f32.mrf.mxu1 }
 0x138   : > { %v1096_v36 = vadd.f32 %v1095_v17, %v1047_v34 }
 0x139   : > { %v1360_v39 = vadd.f32 %v1359_v37, %v1311_v19 }
 0x13a   : > { %v1123_v38 = vpack.c.bf16 %v1096_v36, %v1096_v36 }
 0x13b   : > { %v1386_v40 = vpack.c.bf16 %v1360_v39, %v1360_v39 }
 0x13c   : > { %1139 = vst.msk [vmem:[%s2464_s28 + $0x20] sm:$0xf] %vm868_vm0, %v1123_v38  ;;  %v1048_v41 = vpop.f32.mrf.mxu2 }
 0x13d   : > { %1402 = vst.msk [vmem:[%s2452_s27 + $0x24] sm:$0xf] %vm868_vm0, %v1386_v40  ;;  %v1049_v42 = vadd.f32 %v2446_v7, %v1048_v41 }
 0x13e   : > { %v1313_v27 = vpop.f32.mrf.mxu0 }
 0x13f   : > { %v1097_v43 = vpop.f32.mrf.mxu3  ;;  %v1314_v29 = vadd.f32 %v2433_v61, %v1313_v27  ;;  %v1362_v45 = vpop.f32.mrf.mxu1 }
 0x140   : > { %v1098_v44 = vadd.f32 %v1097_v43, %v1049_v42 }
 0x141   : > { %v1363_v47 = vadd.f32 %v1362_v45, %v1314_v29 }
 0x142   : > { %v1124_v46 = vpack.c.bf16 %v1098_v44, %v1098_v44 }
 0x143   : > { %v1387_v48 = vpack.c.bf16 %v1363_v47, %v1363_v47 }
 0x144   : > { %1140 = vst.msk [vmem:[%s2464_s28 + $0x24] sm:$0xf] %vm868_vm0, %v1124_v46  ;;  %v1051_v49 = vpop.f32.mrf.mxu2 }
 0x145   : > { %1403 = vst.msk [vmem:[%s2452_s27 + $0x28] sm:$0xf] %vm868_vm0, %v1387_v48  ;;  %v1052_v50 = vadd.f32 %v2446_v7, %v1051_v49 }
 0x146   : > { %v1315_v52 = vpop.f32.mrf.mxu0 }
 0x147   : > { %v1100_v51 = vpop.f32.mrf.mxu3  ;;  %v1316_v33 = vadd.f32 %v2433_v61, %v1315_v52  ;;  %v1364_v54 = vpop.f32.mrf.mxu1 }
 0x148   : > { %v1101_v53 = vadd.f32 %v1100_v51, %v1052_v50 }
 0x149   : > { %v1365_v35 = vadd.f32 %v1364_v54, %v1316_v33 }
 0x14a   : > { %v1125_v56 = vpack.c.bf16 %v1101_v53, %v1101_v53 }
 0x14b   : > { %v1388_v58 = vpack.c.bf16 %v1365_v35, %v1365_v35 }
 0x14c   : > { %1141 = vst.msk [vmem:[%s2464_s28 + $0x28] sm:$0xf] %vm868_vm0, %v1125_v56  ;;  %v1053_v59 = vpop.f32.mrf.mxu2 }
 0x14d   : > { %1404 = vst.msk [vmem:[%s2452_s27 + $0x2c] sm:$0xf] %vm868_vm0, %v1388_v58  ;;  %v1054_v60 = vadd.f32 %v2446_v7, %v1053_v59 }
 0x14e   : > { %v1318_v63 = vpop.f32.mrf.mxu0 }
 0x14f   : > { %v1102_v62 = vpop.f32.mrf.mxu3  ;;  %v1319_v1 = vadd.f32 %v2433_v61, %v1318_v63  ;;  %v1367_v2 = vpop.f32.mrf.mxu1 }
 0x150   : > { %v1103_v0 = vadd.f32 %v1102_v62, %v1054_v60 }
 0x151   : > { %v1368_v4 = vadd.f32 %v1367_v2, %v1319_v1 }
 0x152   : > { %v1126_v3 = vpack.c.bf16 %v1103_v0, %v1103_v0 }
 0x153   : > { %v1389_v5 = vpack.c.bf16 %v1368_v4, %v1368_v4 }
 0x154   : > { %1142 = vst.msk [vmem:[%s2464_s28 + $0x2c] sm:$0xf] %vm868_vm0, %v1126_v3  ;;  %v1056_v55 = vpop.f32.mrf.mxu2 }
 0x155   : > { %1405 = vst.msk [vmem:[%s2452_s27 + $0x30] sm:$0xf] %vm868_vm0, %v1389_v5  ;;  %v1057_v6 = vadd.f32 %v2446_v7, %v1056_v55 }
 0x156   : > { %v1320_v26 = vpop.f32.mrf.mxu0 }
 0x157   : > { %v1105_v57 = vpop.f32.mrf.mxu3  ;;  %v1321_v9 = vadd.f32 %v2433_v61, %v1320_v26  ;;  %v1369_v10 = vpop.f32.mrf.mxu1 }
 0x158   : > { %v1106_v8 = vadd.f32 %v1105_v57, %v1057_v6 }
 0x159   : > { %v1370_v12 = vadd.f32 %v1369_v10, %v1321_v9 }
 0x15a   : > { %v1127_v11 = vpack.c.bf16 %v1106_v8, %v1106_v8 }
 0x15b   : > { %v1390_v13 = vpack.c.bf16 %v1370_v12, %v1370_v12 }
 0x15c   : > { %1143 = vst.msk [vmem:[%s2464_s28 + $0x30] sm:$0xf] %vm868_vm0, %v1127_v11  ;;  %v1058_v14 = vpop.f32.mrf.mxu2 }
 0x15d   : > { %1406 = vst.msk [vmem:[%s2452_s27 + $0x34] sm:$0xf] %vm868_vm0, %v1390_v13  ;;  %v1059_v15 = vadd.f32 %v2446_v7, %v1058_v14 }
 0x15e   : > { %v1323_v18 = vpop.f32.mrf.mxu0 }
 0x15f   : > { %v1107_v16 = vpop.f32.mrf.mxu3  ;;  %v1324_v21 = vadd.f32 %v2433_v61, %v1323_v18  ;;  %v1372_v22 = vpop.f32.mrf.mxu1 }
 0x160   : > { %v1108_v20 = vadd.f32 %v1107_v16, %v1059_v15 }
 0x161   : > { %v1373_v24 = vadd.f32 %v1372_v22, %v1324_v21 }
 0x162   : > { %v1128_v23 = vpack.c.bf16 %v1108_v20, %v1108_v20 }
 0x163   : > { %v1391_v25 = vpack.c.bf16 %v1373_v24, %v1373_v24 }
 0x164   : > { %1144 = vst.msk [vmem:[%s2464_s28 + $0x34] sm:$0xf] %vm868_vm0, %v1128_v23  ;;  %v1061_v30 = vpop.f32.mrf.mxu2 }
 0x165   : > { %1407 = vst.msk [vmem:[%s2452_s27 + $0x38] sm:$0xf] %vm868_vm0, %v1391_v25  ;;  %v1062_v31 = vadd.f32 %v2446_v7, %v1061_v30 }
 0x166   : > { %v1325_v34 = vpop.f32.mrf.mxu0 }
 0x167   : > { %v1110_v32 = vpop.f32.mrf.mxu3  ;;  %v1326_v28 = vadd.f32 %v2433_v61, %v1325_v34  ;;  %v1374_v36 = vpop.f32.mrf.mxu1 }
 0x168   : > { %v1111_v17 = vadd.f32 %v1110_v32, %v1062_v31 }
 0x169   : > { %v1375_v37 = vadd.f32 %v1374_v36, %v1326_v28 }
 0x16a   : > { %v1129_v19 = vpack.c.bf16 %v1111_v17, %v1111_v17 }
 0x16b   : > { %v1392_v38 = vpack.c.bf16 %v1375_v37, %v1375_v37 }
 0x16c   : > { %1145 = vst.msk [vmem:[%s2464_s28 + $0x38] sm:$0xf] %vm868_vm0, %v1129_v19  ;;  %v1063_v39 = vpop.f32.mrf.mxu2 }
 0x16d   : > { %1408 = vst.msk [vmem:[%s2452_s27 + $0x3c] sm:$0xf] %vm868_vm0, %v1392_v38  ;;  %v1064_v40 = vadd.f32 %v2446_v7, %v1063_v39 }
 0x16f   : > { %v1112_v41 = vpop.f32.mrf.mxu3 }
 0x170   : > { %v1113_v42 = vadd.f32 %v1112_v41, %v1064_v40 }
 0x172   : > { %v1130_v43 = vpack.c.bf16 %v1113_v42, %v1113_v42 }
 0x174   : > { %1146 = vst.msk [vmem:[%s2464_s28 + $0x3c] sm:$0xf] %vm868_vm0, %v1130_v43 }
 0x175 PF: > { %s20_s13 = sadd.s32 1, %s2102_s13   ;;  %s2582_s30 = smov %s2094_s11 }
 0x176   : > { %p17_p7 = scmp.ge.s32.totalorder %s20_s13, 18   ;;  %s2583_s10 = smov %s2098_s12 }
 0x177   : > { %s2584_s11 = smov %s2587_s14  ;;  %s2585_s12 = smov %s2591_s15 }
 0x178   :  { %19 = sbr.rel (!%p17_p7) target bundleno = 3 (0x3), region = 120 }

</bundles_post_ra>
